<compile_context>
chip_gen: v6e
topology: v6e:2x2x1
jax: 0.10.0
libtpu: 0.0.40
codegen_flags: <defaults>
</compile_context>

<pallas_src>
import jax
import jax.numpy as jnp
from jax.experimental import pallas as pl
from jax.experimental.pallas import tpu as pltpu

_LANE = 128
_MIB = 1024 * 1024


def _round_up(n, m):
    return ((n + m - 1) // m) * m


def _gelu_exact(x):
    # nn.GELU() default = exact erf formulation (x is f32 here).
    # TODO(synk): tanh-approximate GELU would route to the EUP (frees VALU slots on
    # v6e/v7x) but changes numerics vs nn.GELU(); keeping exact erf for parity.
    return x * (0.5 + 0.5 * jax.lax.erf(x * 0.7071067811865476))


def ffn_kernel(x_ref, w1_ref, b1_ref, w2_ref, b2_ref, o_ref, acc_ref):
    # Grid: (row tile i [parallel], out-col tile j [parallel], ff chunk f [arbitrary]).
    # x_ref:  (tm, E_pad)   token tile (native dtype)
    # w1_ref: (E_pad, tf)   fc1 weight chunk
    # b1_ref: (1, tf)       fc1 bias chunk
    # w2_ref: (tf, tn)      fc2 weight chunk
    # b2_ref: (1, tn)       fc2 bias tile
    # o_ref:  (tm, tn)      output tile (written on last ff chunk)
    # acc_ref:(tm, tn)      f32 accumulator scratch
    @pl.when(pl.program_id(2) == 0)
    def _():
        acc_ref[...] = jnp.zeros_like(acc_ref)

    # MXU dots take native-dtype operands; bias/GELU/accumulate run in f32.
    h = jnp.dot(x_ref[...], w1_ref[...], preferred_element_type=jnp.float32)
    h = _gelu_exact(h + b1_ref[...].astype(jnp.float32))
    # TODO(synk): dropout with p > 0 would need pltpu.prng_* masking; p=0.0 -> identity.
    acc_ref[...] += jnp.dot(h.astype(w2_ref.dtype), w2_ref[...],
                            preferred_element_type=jnp.float32)

    @pl.when(pl.program_id(2) == pl.num_programs(2) - 1)
    def _():
        o_ref[...] = (acc_ref[...] + b2_ref[...].astype(jnp.float32)).astype(o_ref.dtype)


def _hw_config():
    """Per-generation VMEM limit / tile budget / default row tile."""
    kind = ""
    try:
        kind = jax.devices()[0].device_kind.lower()
    except Exception:
        pass
    vmem_cap = None
    try:
        vmem_cap = int(pltpu.get_tpu_info().vmem_capacity_bytes)
    except Exception:
        pass
    if vmem_cap is None:
        vmem_cap = 64 * _MIB if "v7" in kind else 128 * _MIB

    if vmem_cap <= 64 * _MIB or "v7" in kind:
        # v7x: 64 MiB physical -> leave headroom for Mosaic internal scratch.
        return dict(vmem_limit=56 * _MIB, budget=48 * _MIB, tm_default=512)
    if "v6" in kind:
        # v6e: weight-BW ridge ~640-720 flops/byte -> tm=1024 crosses it.
        return dict(vmem_limit=112 * _MIB, budget=96 * _MIB, tm_default=1024)
    # v5e (and unknown): compute-limited already at tm=512, but use the big VMEM.
    return dict(vmem_limit=112 * _MIB, budget=96 * _MIB, tm_default=512)


def _divisor_tiles(total, align, cap=None):
    """Divisors of `total` (a multiple of `align`) that are multiples of `align`,
    descending, optionally capped."""
    cands = []
    d = total
    while d >= align:
        if total % d == 0 and (cap is None or d <= cap):
            cands.append(d)
        d -= align
    return cands or [align]


def _footprint(tm, tf, tn, E_pad, in_isz, out_isz, wbuf):
    """VMEM-resident bytes estimate for a (tm, tf, tn) tiling."""
    x_b = 2 * tm * E_pad * in_isz                       # double-buffered x tile
    w1_b = wbuf * E_pad * tf * in_isz                   # W1 chunk buffers
    w2_b = wbuf * tf * tn * in_isz                      # W2 chunk buffers
    bias_b = wbuf * tf * in_isz + 2 * tn * in_isz
    out_b = 2 * tm * tn * out_isz                       # double-buffered out tile
    acc_b = tm * tn * 4                                 # f32 accumulator scratch
    # (tm, tf) hidden intermediate lives in Mosaic-managed VMEM (f32 + cast copy).
    h_b = tm * tf * 4 + (tm * tf * in_isz if in_isz < 4 else 0)
    return x_b + w1_b + w2_b + bias_b + out_b + acc_b + h_b


def positionwise_ffn(x, w1, b1, w2, b2, *, tm=None, tf=None, tn=None):
    """x: [B, S, E]; w1: [E, F]; b1: [F]; w2: [F, E]; b2: [E].

    tm: row (token) tile; default chosen per TPU generation.
    tf: cap on the streamed ff-dim chunk (None -> keep weights VMEM-resident if they fit).
    tn: cap on the output-embedding tile (None -> full E).
    """
    B, S, E = x.shape
    F_dim = w1.shape[1]
    M = B * S

    hw = _hw_config()
    in_isz = jnp.dtype(x.dtype).itemsize
    out_isz = in_isz
    sublane = 16 if out_isz <= 2 else 8

    # Lane-aligned padded dims (128 only: padding to the 256 MXU granule adds
    # pure-zero traffic without reducing systolic passes).
    E_pad = _round_up(E, _LANE)
    F_pad = _round_up(F_dim, _LANE)

    # Row-tile candidates (clamped to sublane multiples, halving for the budget).
    tm_req = hw["tm_default"] if tm is None else tm
    tm_req = max(sublane, _round_up(tm_req, sublane))
    tm0 = min(tm_req, _round_up(M, sublane))
    tm_cands = []
    t = tm0
    while True:
        tm_cands.append(t)
        nxt = max(sublane, _round_up(t // 2, sublane))
        if nxt >= t:
            break
        t = nxt

    # ff / out-column tile candidates: divisors of the padded dims (no extra F padding).
    tf_cap = None if tf is None else max(_LANE, _round_up(tf, _LANE))
    tn_cap = None if tn is None else max(_LANE, _round_up(tn, _LANE))
    tf_cands = _divisor_tiles(F_pad, _LANE, tf_cap)
    tn_cands = _divisor_tiles(E_pad, _LANE, tn_cap)

    budget = hw["budget"]
    chosen = None
    for tm_c in tm_cands:                      # shrink the row tile last
        for tn_c in tn_cands:                  # then the output-column tile
            for tf_c in tf_cands:              # shrink the streamed ff chunk first
                if _footprint(tm_c, tf_c, tn_c, E_pad, in_isz, out_isz, 2) <= budget:
                    chosen = (tm_c, tf_c, tn_c)
                    break
            if chosen:
                break
        if chosen:
            break
    if chosen is None:                         # degenerate fallback; still correct
        chosen = (sublane, _LANE, _LANE)
    tm_eff, tf_eff, tn_eff = chosen

    M_pad = _round_up(M, tm_eff)
    n_i, n_j, n_f = M_pad // tm_eff, E_pad // tn_eff, F_pad // tf_eff

    # Deeper weight buffering only helps when the ff axis is actually streamed
    # (hides back-to-back chunk fetches at row-tile boundaries) and fits the budget.
    deep_w = (n_f > 1 and
              _footprint(tm_eff, tf_eff, tn_eff, E_pad, in_isz, out_isz, 3) <= budget)
    w_pipe = dict(pipeline_mode=pl.Buffered(3)) if deep_w else {}

    # Zero-pad (skipped entirely when already aligned). Padding is inert:
    # padded W1 cols + zero b1 -> GELU(0)=0; padded W2 rows are zero; padded M/E sliced off.
    def pad2d(a, rows, cols):
        r, c = a.shape
        return a if (r == rows and c == cols) else jnp.pad(a, ((0, rows - r), (0, cols - c)))

    x2d = pad2d(x.reshape(M, E), M_pad, E_pad)
    w1_p = pad2d(w1, E_pad, F_pad)
    w2_p = pad2d(w2, F_pad, E_pad)
    b1_p = pad2d(b1.reshape(1, F_dim), 1, F_pad)
    b2_p = pad2d(b2.reshape(1, E), 1, E_pad)

    out2d = pl.pallas_call(
        ffn_kernel,
        out_shape=jax.ShapeDtypeStruct((M_pad, E_pad), x.dtype),
        grid_spec=pltpu.PrefetchScalarGridSpec(
            num_scalar_prefetch=0,
            grid=(n_i, n_j, n_f),
            in_specs=[
                pl.BlockSpec((tm_eff, E_pad), lambda i, j, f: (i, 0)),              # x tile
                pl.BlockSpec((E_pad, tf_eff), lambda i, j, f: (0, f), **w_pipe),    # W1 chunk
                pl.BlockSpec((1, tf_eff), lambda i, j, f: (0, f)),                  # b1 chunk
                pl.BlockSpec((tf_eff, tn_eff), lambda i, j, f: (f, j), **w_pipe),   # W2 chunk
                pl.BlockSpec((1, tn_eff), lambda i, j, f: (0, j)),                  # b2 tile
            ],
            out_specs=pl.BlockSpec((tm_eff, tn_eff), lambda i, j, f: (i, j)),
            scratch_shapes=[pltpu.VMEM((tm_eff, tn_eff), jnp.float32)],
        ),
        compiler_params=pltpu.CompilerParams(
            dimension_semantics=("parallel", "parallel", "arbitrary"),
            vmem_limit_bytes=hw["vmem_limit"],
        ),
    )(x2d, w1_p, b1_p, w2_p, b2_p)

    return out2d[:M, :E].reshape(B, S, E)


if __name__ == "__main__":
    key = jax.random.PRNGKey(0)

    def make_params(k, embed_dim, ff_dim, dtype=jnp.float32):
        k1, kb1, k2, kb2 = jax.random.split(k, 4)
        lim1 = 1.0 / float(embed_dim) ** 0.5
        lim2 = 1.0 / float(ff_dim) ** 0.5
        w1 = jax.random.uniform(k1, (embed_dim, ff_dim), minval=-lim1, maxval=lim1, dtype=dtype)
        b1 = jax.random.uniform(kb1, (ff_dim,), minval=-lim1, maxval=lim1, dtype=dtype)
        w2 = jax.random.uniform(k2, (ff_dim, embed_dim), minval=-lim2, maxval=lim2, dtype=dtype)
        b2 = jax.random.uniform(kb2, (embed_dim,), minval=-lim2, maxval=lim2, dtype=dtype)
        return w1, b1, w2, b2

    def reference(x, w1, b1, w2, b2):
        xf, w1f, b1f, w2f, b2f = (a.astype(jnp.float32) for a in (x, w1, b1, w2, b2))
        return jax.nn.gelu(xf @ w1f + b1f, approximate=False) @ w2f + b2f

    # 1) Small f32 shape matching the module's contract (weights-resident path).
    kx, kp, key = jax.random.split(key, 3)
    batch, seq, embed_dim, ff_dim = 2, 8, 32, 64
    x = jax.random.normal(kx, (batch, seq, embed_dim), dtype=jnp.float32)
    w1, b1, w2, b2 = make_params(kp, embed_dim, ff_dim)
    out = jax.block_until_ready(positionwise_ffn(x, w1, b1, w2, b2))
    ref = reference(x, w1, b1, w2, b2)
    assert out.shape == (batch, seq, embed_dim)
    assert jnp.allclose(out, ref, atol=1e-4, rtol=1e-4), "mismatch vs reference (small)"

    # 2) Multi-chunk ff accumulation + output-column blocking (grid axes 1 and 2 > 1).
    kx2, kp2, key = jax.random.split(key, 3)
    batch2, seq2, embed2, ff2 = 2, 64, 256, 384
    x2 = jax.random.normal(kx2, (batch2, seq2, embed2), dtype=jnp.float32)
    w1b, b1b, w2b, b2b = make_params(kp2, embed2, ff2)
    out2 = jax.block_until_ready(positionwise_ffn(x2, w1b, b1b, w2b, b2b, tf=128, tn=128))
    ref2 = reference(x2, w1b, b1b, w2b, b2b)
    assert out2.shape == (batch2, seq2, embed2)
    assert jnp.allclose(out2, ref2, atol=1e-4, rtol=1e-4), "mismatch vs reference (multi-chunk)"

    # 3) bf16 hot path (native-dtype MXU operands, f32 accumulation).
    kx3, kp3, key = jax.random.split(key, 3)
    batch3, seq3, embed3, ff3 = 2, 32, 128, 256
    x3 = jax.random.normal(kx3, (batch3, seq3, embed3), dtype=jnp.bfloat16)
    w1c, b1c, w2c, b2c = make_params(kp3, embed3, ff3, dtype=jnp.bfloat16)
    out3 = jax.block_until_ready(positionwise_ffn(x3, w1c, b1c, w2c, b2c))
    ref3 = reference(x3, w1c, b1c, w2c, b2c)
    assert out3.shape == (batch3, seq3, embed3)
    assert jnp.allclose(out3.astype(jnp.float32), ref3, atol=5e-2, rtol=5e-2), \
        "mismatch vs reference (bf16)"

    print("KERNEL_OK")
</pallas_src>

<mosaic_0001>
module attributes {stable_mosaic.version = 11 : i64} {
  func.func @ffn_kernel(%arg0: i32, %arg1: i32, %arg2: i32, %arg3: memref<16x128xf32, #tpu.memory_space<vmem>>, %arg4: memref<128x128xf32, #tpu.memory_space<vmem>>, %arg5: memref<1x128xf32, #tpu.memory_space<vmem>>, %arg6: memref<128x128xf32, #tpu.memory_space<vmem>>, %arg7: memref<1x128xf32, #tpu.memory_space<vmem>>, %arg8: memref<16x128xf32, #tpu.memory_space<vmem>>, %arg9: memref<16x128xf32, #tpu.memory_space<vmem>>) attributes {dimension_semantics = [#tpu.dimension_semantics<parallel>, #tpu.dimension_semantics<parallel>, #tpu.dimension_semantics<arbitrary>], iteration_bounds = array<i64: 1, 1, 1>, scalar_prefetch = 0 : i64, scratch_operands = 1 : i64, tpu.core_type = #tpu.core_type<tc>, window_params = [{transform_indices = @transform_0, window_bounds = array<i64: 16, 128>}, {transform_indices = @transform_1, window_bounds = array<i64: 128, 128>}, {transform_indices = @transform_2, window_bounds = array<i64: 1, 128>}, {transform_indices = @transform_3, window_bounds = array<i64: 128, 128>}, {transform_indices = @transform_4, window_bounds = array<i64: 1, 128>}, {transform_indices = @transform_5, window_bounds = array<i64: 16, 128>}]} {
    %c0_i32 = arith.constant 0 : i32
    %0 = arith.cmpi eq, %arg2, %c0_i32 : i32
    %1 = arith.extui %0 : i1 to i32
    %c0_i32_0 = arith.constant 0 : i32
    %2 = arith.cmpi ne, %1, %c0_i32_0 : i32
    scf.if %2 {
      %cst_18 = arith.constant 0.000000e+00 : f32
      %25 = vector.broadcast %cst_18 : f32 to vector<16x128xf32>
      %c0_19 = arith.constant 0 : index
      %c0_20 = arith.constant 0 : index
      %26 = vector.load %arg9[%c0_19, %c0_20] : memref<16x128xf32, #tpu.memory_space<vmem>>, vector<16x128xf32>
      tpu.vector_store %arg9[%c0_19, %c0_20], %25 {strides = array<i32>} : memref<16x128xf32, #tpu.memory_space<vmem>>, vector<16x128xf32>,
    } else {
    }
    %c0 = arith.constant 0 : index
    %c0_1 = arith.constant 0 : index
    %3 = vector.load %arg3[%c0, %c0_1] : memref<16x128xf32, #tpu.memory_space<vmem>>, vector<16x128xf32>
    %c0_2 = arith.constant 0 : index
    %c0_3 = arith.constant 0 : index
    %4 = vector.load %arg4[%c0_2, %c0_3] : memref<128x128xf32, #tpu.memory_space<vmem>>, vector<128x128xf32>
    %cst = arith.constant dense<0.000000e+00> : vector<16x128xf32>
    %5 = tpu.matmul %3, %4, %cst {dimension_numbers = #tpu.dot_dimension_numbers<[1], [0], [0], [1], [0, 0, 1, 1], [], []>} : vector<16x128xf32>, vector<128x128xf32>, vector<16x128xf32> -> vector<16x128xf32>
    %c0_4 = arith.constant 0 : index
    %c0_5 = arith.constant 0 : index
    %6 = vector.load %arg5[%c0_4, %c0_5] : memref<1x128xf32, #tpu.memory_space<vmem>>, vector<1x128xf32>
    %7 = vector.broadcast %6 : vector<1x128xf32> to vector<16x128xf32>
    %8 = arith.addf %5, %7 : vector<16x128xf32>
    %cst_6 = arith.constant 0.707106769 : f32
    %9 = vector.broadcast %cst_6 : f32 to vector<16x128xf32>
    %10 = arith.mulf %8, %9 : vector<16x128xf32>
    %11 = math.erf %10 : vector<16x128xf32>
    %cst_7 = arith.constant 5.000000e-01 : f32
    %12 = vector.broadcast %cst_7 : f32 to vector<16x128xf32>
    %13 = arith.mulf %12, %11 : vector<16x128xf32>
    %cst_8 = arith.constant 5.000000e-01 : f32
    %14 = vector.broadcast %cst_8 : f32 to vector<16x128xf32>
    %15 = arith.addf %14, %13 : vector<16x128xf32>
    %16 = arith.mulf %8, %15 : vector<16x128xf32>
    %c0_9 = arith.constant 0 : index
    %c0_10 = arith.constant 0 : index
    %17 = vector.load %arg9[%c0_9, %c0_10] : memref<16x128xf32, #tpu.memory_space<vmem>>, vector<16x128xf32>
    %c0_11 = arith.constant 0 : index
    %c0_12 = arith.constant 0 : index
    %18 = vector.load %arg6[%c0_11, %c0_12] : memref<128x128xf32, #tpu.memory_space<vmem>>, vector<128x128xf32>
    %cst_13 = arith.constant dense<0.000000e+00> : vector<16x128xf32>
    %19 = tpu.matmul %16, %18, %cst_13 {dimension_numbers = #tpu.dot_dimension_numbers<[1], [0], [0], [1], [0, 0, 1, 1], [], []>} : vector<16x128xf32>, vector<128x128xf32>, vector<16x128xf32> -> vector<16x128xf32>
    %20 = arith.addf %17, %19 : vector<16x128xf32>
    %c0_14 = arith.constant 0 : index
    %c0_15 = arith.constant 0 : index
    %21 = vector.load %arg9[%c0_14, %c0_15] : memref<16x128xf32, #tpu.memory_space<vmem>>, vector<16x128xf32>
    tpu.vector_store %arg9[%c0_14, %c0_15], %20 {strides = array<i32>} : memref<16x128xf32, #tpu.memory_space<vmem>>, vector<16x128xf32>,
    %c0_i32_16 = arith.constant 0 : i32
    %22 = arith.cmpi eq, %arg2, %c0_i32_16 : i32
    %23 = arith.extui %22 : i1 to i32
    %c0_i32_17 = arith.constant 0 : i32
    %24 = arith.cmpi ne, %23, %c0_i32_17 : i32
    scf.if %24 {
      %c0_18 = arith.constant 0 : index
      %c0_19 = arith.constant 0 : index
      %25 = vector.load %arg9[%c0_18, %c0_19] : memref<16x128xf32, #tpu.memory_space<vmem>>, vector<16x128xf32>
      %c0_20 = arith.constant 0 : index
      %c0_21 = arith.constant 0 : index
      %26 = vector.load %arg7[%c0_20, %c0_21] : memref<1x128xf32, #tpu.memory_space<vmem>>, vector<1x128xf32>
      %27 = vector.broadcast %26 : vector<1x128xf32> to vector<16x128xf32>
      %28 = arith.addf %25, %27 : vector<16x128xf32>
      %c0_22 = arith.constant 0 : index
      %c0_23 = arith.constant 0 : index
      %29 = vector.load %arg8[%c0_22, %c0_23] : memref<16x128xf32, #tpu.memory_space<vmem>>, vector<16x128xf32>
      tpu.vector_store %arg8[%c0_22, %c0_23], %28 {strides = array<i32>} : memref<16x128xf32, #tpu.memory_space<vmem>>, vector<16x128xf32>,
    } else {
    }
    return
  }
  func.func @transform_0(%arg0: i32, %arg1: i32, %arg2: i32) -> (i32, i32) {
    %c0_i32 = arith.constant 0 : i32
    %c0_i32_0 = arith.constant 0 : i32
    return %arg0, %c0_i32 : i32, i32
  }
  func.func @transform_1(%arg0: i32, %arg1: i32, %arg2: i32) -> (i32, i32) {
    %c0_i32 = arith.constant 0 : i32
    %c0_i32_0 = arith.constant 0 : i32
    return %c0_i32, %arg2 : i32, i32
  }
  func.func @transform_2(%arg0: i32, %arg1: i32, %arg2: i32) -> (i32, i32) {
    %c0_i32 = arith.constant 0 : i32
    %c0_i32_0 = arith.constant 0 : i32
    return %c0_i32, %arg2 : i32, i32
  }
  func.func @transform_3(%arg0: i32, %arg1: i32, %arg2: i32) -> (i32, i32) {
    %c0_i32 = arith.constant 0 : i32
    return %arg2, %arg1 : i32, i32
  }
  func.func @transform_4(%arg0: i32, %arg1: i32, %arg2: i32) -> (i32, i32) {
    %c0_i32 = arith.constant 0 : i32
    %c0_i32_0 = arith.constant 0 : i32
    return %c0_i32, %arg1 : i32, i32
  }
  func.func @transform_5(%arg0: i32, %arg1: i32, %arg2: i32) -> (i32, i32) {
    %c0_i32 = arith.constant 0 : i32
    return %arg0, %arg1 : i32, i32
  }
}

</mosaic_0001>

<bundles_post_ra>
// kernel: tpu_custom_call.1
= control target key start
LH: loop header
LB: loop body
LE: loop exit
PB: predicated region body
PF: predicated region fallthrough
CT: control target
= control target key end

     0   :  { %10 = vsyncpa [#allocation4], 0  ;;  %s579_s0 = inlined_call_operand.hbm [shape: f32[16,128], index: 0, kind: input, shape index: {}]   ;;  %s580_s1 = inlined_call_operand.hbm [shape: f32[128,128], index: 1, kind: input, shape index: {}]   ;;  %s581_s2 = inlined_call_operand.vmem [shape: f32[1,128], index: 2, kind: input, shape index: {}]   ;;  %s582_s3 = inlined_call_operand.hbm [shape: f32[128,128], index: 3, kind: input, shape index: {}]   ;;  %s583_s4 = inlined_call_operand.vmem [shape: f32[1,128], index: 4, kind: input, shape index: {}]   ;;  %s584_s5 = inlined_call_operand.hbm [shape: f32[16,128], index: 5, kind: output, shape index: {}]  }
   0x1   :  { %11 = vsyncpa [#allocation7], 0 }
   0x2   :  { %12 = vsyncpa [#allocation5], 0  ;;  %s513_s18 = smov [#allocation6]   ;;  %s514_s20 = smov [#allocation3]  }
   0x3   :  { %s30_s19 = sshll.u32 %s513_s18, 4  ;;  %s18_s21 = sshll.u32 %s514_s20, 4  ;;  %s31_s19 = int_to_ptr.vmem [resolvable:$true] %s30_s19  ;;  %s19_s21 = int_to_ptr.vmem [resolvable:$true] %s18_s21 }
   0x4   :  { %s435_s22 = scalar_lea.vmem %s31_s19, 2048  ;;  %p440_p1 = scmp.lt.s32.totalorder %s31_s19, %s31_s19 }
   0x5   :  { %p436_p0 = scmp.ne.s32.totalorder %s31_s19, %s435_s22  ;;  %p441_p2 = scmp.lt.s32.totalorder %s435_s22, %s435_s22 }
   0x7   :  { %p442_p3 = por %p441_p2, %p440_p1 }
   0x9   :  { %p443_p4 = pnand %p442_p3, %p436_p0 }
   0xb   :  { %446 = shalt.err (!%p443_p4)
}
   0xc   :  { %s515_s23 = smov 128   ;;  %s516_s24 = smov 8  }
   0xd   :  { %36 = dma.hbm_to_vmem [thread:$0]  %s580_s1, 2048, %s31_s19, [#allocation7], %s515_s23, %s515_s23, %s516_s24  }
   0xe   :  { %s455_s27 = scalar_lea.vmem %s19_s21, 256  ;;  %p460_p6 = scmp.lt.s32.totalorder %s19_s21, %s19_s21 }
   0xf   :  { %p456_p5 = scmp.ne.s32.totalorder %s19_s21, %s455_s27  ;;  %p461_p7 = scmp.lt.s32.totalorder %s455_s27, %s455_s27 }
  0x11   :  { %p462_p8 = por %p461_p7, %p460_p6 }
  0x13   :  { %p463_p9 = pnand %p462_p8, %p456_p5 }
  0x15   :  { %466 = shalt.err (!%p463_p9)
}
  0x16   :  { %24 = dma.hbm_to_vmem [thread:$0]  %s579_s0, 256, %s19_s21, [#allocation4], %s515_s23, %s515_s23, %s516_s24  }
  0x17   :  { %s517_s30 = smov [#allocation8]  }
  0x18   :  { %s44_s6 = sshll.u32 %s517_s30, 4  ;;  %s45_s6 = int_to_ptr.vmem [resolvable:$true] %s44_s6 }
  0x19   :  { %s475_s7 = scalar_lea.vmem %s45_s6, 2048  ;;  %p480_p11 = scmp.lt.s32.totalorder %s45_s6, %s45_s6 }
  0x1a   :  { %p476_p10 = scmp.ne.s32.totalorder %s45_s6, %s475_s7  ;;  %p481_p12 = scmp.lt.s32.totalorder %s475_s7, %s475_s7 }
  0x1c   :  { %p482_p13 = por %p481_p12, %p480_p11 }
  0x1e   :  { %p483_p0 = pnand %p482_p13, %p476_p10 }
  0x20   :  { %486 = shalt.err (!%p483_p0)
}
  0x21   :  { %50 = dma.hbm_to_vmem [thread:$0]  %s582_s3, 2048, %s45_s6, [#allocation7], %s515_s23, %s515_s23, %s516_s24  }
  0x22   :  { %507 = dma.done.wait [#allocation4], 256  }
  0x23   :  { %508 = vsyncadd [#allocation4], 4294967040 }
  0x24   :  { %509 = dma.done.wait [#allocation7], 4096  }
  0x25   :  { %510 = vsyncadd [#allocation7], 4294963200  ;;  %v85_v0 = vld [vmem:[#allocation6 + $0x78] sm:$0xff]  ;;  %v84_v1 = vld [vmem:[#allocation6 + $0x70] sm:$0xff]  ;;  %s518_s10 = smov [#allocation9]  }
  0x26   :  { %347 = vmatprep.subr.mxu0 %v85_v0  ;;  %v83_v2 = vld [vmem:[#allocation6 + $0x68] sm:$0xff]  ;;  %v82_v3 = vld [vmem:[#allocation6 + $0x60] sm:$0xff]  ;;  %v68_v4 = vld [vmem:[#allocation3] sm:$0xff]  ;;  %s296_s11 = sshll.u32 %s518_s10, 4  ;;  %s297_s11 = int_to_ptr.vmem [resolvable:$true] %s296_s11 }
  0x27   :  { %348 = vmatpush3.msra.mxu0 %v85_v0  ;;  %v81_v5 = vld [vmem:[#allocation6 + $0x58] sm:$0xff]  ;;  %379 = vmatprep.mubr.f32.mxu0 %v68_v4  ;;  %v194_v7 = vld [vmem:[#allocation8 + $0x70] sm:$0xff]  ;;  %v79_v9 = vld [vmem:[#allocation6 + $0x48] sm:$0xff]  ;;  %s487_s12 = scalar_lea.vmem %s297_s11, 256  ;;  %p492_p2 = scmp.lt.s32.totalorder %s297_s11, %s297_s11 }
  0x28   :  { %349 = vmatprep.subr.mxu0 %v84_v1  ;;  %v195_v6 = vld [vmem:[#allocation8 + $0x78] sm:$0xff]  ;;  %v80_v8 = vld [vmem:[#allocation6 + $0x50] sm:$0xff]  ;;  %v78_v10 = vld [vmem:[#allocation6 + $0x40] sm:$0xff]  ;;  %p488_p1 = scmp.ne.s32.totalorder %s297_s11, %s487_s12  ;;  %p493_p3 = scmp.lt.s32.totalorder %s487_s12, %s487_s12 }
  0x29   :  { %350 = vmatpush3.msra.mxu0 %v84_v1  ;;  %382 = vmatprep.subr.mxu1 %v195_v6  ;;  %v77_v11 = vld [vmem:[#allocation6 + $0x38] sm:$0xff]  ;;  %v76_v12 = vld [vmem:[#allocation6 + $0x30] sm:$0xff]  ;;  %v75_v13 = vld [vmem:[#allocation6 + $0x28] sm:$0xff] }
  0x2a   :  { %351 = vmatprep.subr.mxu0 %v83_v2  ;;  %383 = vmatpush3.msra.mxu1 %v195_v6  ;;  %v74_v14 = vld [vmem:[#allocation6 + $0x20] sm:$0xff]  ;;  %v73_v15 = vld [vmem:[#allocation6 + $0x18] sm:$0xff]  ;;  %v72_v16 = vld [vmem:[#allocation6 + $0x10] sm:$0xff]  ;;  %p494_p4 = por %p493_p3, %p492_p2 }
  0x2b   :  { %352 = vmatpush3.msra.mxu0 %v83_v2  ;;  %384 = vmatprep.subr.mxu1 %v194_v7  ;;  %v71_v17 = vld [vmem:[#allocation6 + $0x8] sm:$0xff]  ;;  %v70_v18 = vld [vmem:[#allocation6] sm:$0xff]  ;;  %v69_v19 = vld [vmem:[#allocation3 + $0x8] sm:$0xff] }
  0x2c   :  { %353 = vmatprep.subr.mxu0 %v82_v3  ;;  %385 = vmatpush3.msra.mxu1 %v194_v7  ;;  %v193_v20 = vld [vmem:[#allocation8 + $0x68] sm:$0xff]  ;;  %v192_v21 = vld [vmem:[#allocation8 + $0x60] sm:$0xff]  ;;  %v191_v22 = vld [vmem:[#allocation8 + $0x58] sm:$0xff]  ;;  %p495_p5 = pnand %p494_p4, %p488_p1 }
  0x2d   :  { %354 = vmatpush3.msra.mxu0 %v82_v3  ;;  %386 = vmatprep.subr.mxu1 %v193_v20  ;;  %v190_v23 = vld [vmem:[#allocation8 + $0x50] sm:$0xff]  ;;  %v189_v24 = vld [vmem:[#allocation8 + $0x48] sm:$0xff]  ;;  %v188_v25 = vld [vmem:[#allocation8 + $0x40] sm:$0xff] }
  0x2e   :  { %355 = vmatprep.subr.mxu0 %v81_v5  ;;  %387 = vmatpush3.msra.mxu1 %v193_v20  ;;  %v187_v26 = vld [vmem:[#allocation8 + $0x38] sm:$0xff]  ;;  %v186_v27 = vld [vmem:[#allocation8 + $0x30] sm:$0xff]  ;;  %v185_v28 = vld [vmem:[#allocation8 + $0x28] sm:$0xff] }
  0x2f   :  { %356 = vmatpush3.msra.mxu0 %v81_v5  ;;  %388 = vmatprep.subr.mxu1 %v192_v21  ;;  %v184_v29 = vld [vmem:[#allocation8 + $0x20] sm:$0xff]  ;;  %v183_v30 = vld [vmem:[#allocation8 + $0x18] sm:$0xff]  ;;  %v182_v31 = vld [vmem:[#allocation8 + $0x10] sm:$0xff] }
  0x30   :  { %357 = vmatprep.subr.mxu0 %v80_v8  ;;  %389 = vmatpush3.msra.mxu1 %v192_v21  ;;  %v181_v32 = vld [vmem:[#allocation8 + $0x8] sm:$0xff]  ;;  %v180_v33 = vld [vmem:[#allocation8] sm:$0xff]  ;;  %v309_v34 = vld [vmem:[%s581_s2] ss:$0 sm:$0xff] }
  0x31   :  { %358 = vmatpush3.msra.mxu0 %v80_v8  ;;  %390 = vmatprep.subr.mxu1 %v191_v22  ;;  %v310_v49 = vld [vmem:[%s583_s4] ss:$0 sm:$0xff] }
  0x32   :  { %359 = vmatprep.subr.mxu0 %v79_v9  ;;  %391 = vmatpush3.msra.mxu1 %v191_v22 }
  0x33   :  { %360 = vmatpush3.msra.mxu0 %v79_v9  ;;  %392 = vmatprep.subr.mxu1 %v190_v23 }
  0x34   :  { %361 = vmatprep.subr.mxu0 %v78_v10  ;;  %393 = vmatpush3.msra.mxu1 %v190_v23 }
  0x35   :  { %362 = vmatpush3.msra.mxu0 %v78_v10  ;;  %394 = vmatprep.subr.mxu1 %v189_v24 }
  0x36   :  { %363 = vmatprep.subr.mxu0 %v77_v11  ;;  %395 = vmatpush3.msra.mxu1 %v189_v24 }
  0x37   :  { %364 = vmatpush3.msra.mxu0 %v77_v11  ;;  %396 = vmatprep.subr.mxu1 %v188_v25 }
  0x38   :  { %365 = vmatprep.subr.mxu0 %v76_v12  ;;  %397 = vmatpush3.msra.mxu1 %v188_v25 }
  0x39   :  { %366 = vmatpush3.msra.mxu0 %v76_v12  ;;  %398 = vmatprep.subr.mxu1 %v187_v26 }
  0x3a   :  { %367 = vmatprep.subr.mxu0 %v75_v13  ;;  %399 = vmatpush3.msra.mxu1 %v187_v26 }
  0x3b   :  { %368 = vmatpush3.msra.mxu0 %v75_v13  ;;  %400 = vmatprep.subr.mxu1 %v186_v27 }
  0x3c   :  { %369 = vmatprep.subr.mxu0 %v74_v14  ;;  %401 = vmatpush3.msra.mxu1 %v186_v27 }
  0x3d   :  { %370 = vmatpush3.msra.mxu0 %v74_v14  ;;  %402 = vmatprep.subr.mxu1 %v185_v28 }
  0x3e   :  { %371 = vmatprep.subr.mxu0 %v73_v15  ;;  %403 = vmatpush3.msra.mxu1 %v185_v28 }
  0x3f   :  { %372 = vmatpush3.msra.mxu0 %v73_v15  ;;  %404 = vmatprep.subr.mxu1 %v184_v29 }
  0x40   :  { %373 = vmatprep.subr.mxu0 %v72_v16  ;;  %405 = vmatpush3.msra.mxu1 %v184_v29 }
  0x41   :  { %374 = vmatpush3.msra.mxu0 %v72_v16  ;;  %406 = vmatprep.subr.mxu1 %v183_v30 }
  0x42   :  { %375 = vmatprep.subr.mxu0 %v71_v17  ;;  %407 = vmatpush3.msra.mxu1 %v183_v30 }
  0x43   :  { %376 = vmatpush3.msra.mxu0 %v71_v17  ;;  %408 = vmatprep.subr.mxu1 %v182_v31 }
  0x44   :  { %377 = vmatprep.subr.mxu0 %v70_v18  ;;  %409 = vmatpush3.msra.mxu1 %v182_v31 }
  0x45   :  { %378 = vmatpush3.msra.mxu0 %v70_v18  ;;  %410 = vmatprep.subr.mxu1 %v181_v32 }
  0x46   :  { %380 = vmatmul.mubr.f32.vlgmr.msra.gmra.mxu0 %v69_v19  ;;  %411 = vmatpush3.msra.mxu1 %v181_v32 }
  0x47   :  { %412 = vmatprep.subr.mxu1 %v180_v33 }
  0x48   :  { %413 = vmatpush3.msra.mxu1 %v180_v33 }
 0x106   :  { %v381_v35 = vpop.f32.mrf.mxu0 }
 0x107   :  { %v165_v36 = vadd.f32 %v381_v35, %v309_v34 }
 0x108   :  { %v159_v37 = vpop.f32.mrf.mxu0 }
 0x109   :  { %v169_v38 = vmul.f32 0.70710677, %v165_v36  ;;  %v160_v39 = vadd.f32 %v309_v34, %v159_v37 }
 0x10b   :  { %423 = verf.f32 %v169_v38  ;;  %v168_v40 = vmul.f32 0.70710677, %v160_v39 }
 0x10d   :  { %425 = verf.f32 %v168_v40 }
 0x118   :  { %v424_v41 = vpop.eup %423 }
 0x119   :  { %v173_v42 = vmul.f32 0.5, %v424_v41 }
 0x11a   :  { %v426_v43 = vpop.eup %425 }
 0x11b   :  { %v172_v44 = vmul.f32 0.5, %v426_v43  ;;  %v175_v45 = vadd.f32 0.5, %v173_v42 }
 0x11d   :  { %v174_v46 = vadd.f32 0.5, %v172_v44  ;;  %v177_v48 = vmul.f32 %v175_v45, %v165_v36 }
 0x11f   :  { %v176_v47 = vmul.f32 %v174_v46, %v160_v39 }
 0x121   :  { %414 = vmatprep.mubr.f32.mxu1 %v176_v47 }
 0x122   :  { %415 = vmatmul.mubr.f32.vlgmr.msra.gmra.mxu1 %v177_v48 }
 0x1e2   :  { %v416_v50 = vpop.f32.mrf.mxu1 }
 0x1e3   :  { %v288_v51 = vadd.f32 %v416_v50, %v310_v49 }
 0x1e4   :  { %v262_v52 = vpop.f32.mrf.mxu1 }
 0x1e5   :  { %290 = vst [vmem:[#allocation9 + $0x8] sm:$0xff] %v288_v51  ;;  %v287_v53 = vadd.f32 %v310_v49, %v262_v52 }
 0x1e7   :  { %289 = vst [vmem:[#allocation9] sm:$0xff] %v287_v53 }
 0x1e8   :  { %498 = shalt.err (!%p495_p5)
}
 0x1e9   :  { %302 = dma.vmem_to_hbm [thread:$0]  %s297_s11, 256, %s584_s5, [#allocation5], %s515_s23, %s515_s23, %s516_s24  }
 0x1ea   :  { %511 = dma.done.wait [#allocation5], 256  }
 0x1eb   :  { %512 = vsyncadd [#allocation5], 4294967040 }
 0x1ec   :  { %306 = vsyncpa [#allocation4], 1 }
 0x1ed   :  { %307 = vsyncpa [#allocation7], 1 }
 0x1ee   :  { %308 = vsyncpa [#allocation5], 1 }

</bundles_post_ra>
